<compile_context>
chip_gen: v7x
topology: tpu7x:2x2x1
jax: 0.10.0
libtpu: 0.0.40
codegen_flags: <defaults>
</compile_context>

<pallas_src>
import functools

import jax
import jax.numpy as jnp
from jax.experimental import pallas as pl
from jax.experimental.pallas import tpu as pltpu


def _sdpa_kernel(q_ref, k_ref, v_ref, out_ref, attn_ref, log_attn_ref,
                 *, inv_temperature: float, negative_slope: float):
    # Fold the temperature scale into q: TQ*D multiplies instead of TQ*Lk.
    q = q_ref[...]
    q = q * jnp.asarray(inv_temperature, dtype=q.dtype)   # (B_blk, TQ, D)
    k = k_ref[...]                                         # (B_blk, Lk, D)
    v = v_ref[...]                                         # (B_blk, Lk, Dv)

    # scores = (q / temperature) @ k^T  -- batched contraction, f32 accumulate,
    # no materialized K transpose.
    scores = jnp.einsum("bqd,bkd->bqk", q, k,
                        preferred_element_type=jnp.float32)

    # log_softmax(scores, axis=-1)
    s_max = jnp.max(scores, axis=-1, keepdims=True)
    shifted = scores - s_max
    lse = jnp.log(jnp.sum(jnp.exp(shifted), axis=-1, keepdims=True))
    log_attn = shifted - lse

    # attn_ = softmax(leaky_relu(scores, slope), axis=-1).
    # leaky_relu is monotonic, so max(leaky(x)) == leaky(max(x)): reuse s_max
    # instead of a second full cross-lane reduction over the score matrix.
    leaky = jnp.where(scores > 0, scores, negative_slope * scores)
    l_max = jnp.where(s_max > 0, s_max, negative_slope * s_max)
    p = jnp.exp(leaky - l_max)
    denom = jnp.sum(p, axis=-1, keepdims=True)
    attn_ = p * pl.reciprocal(denom, approx=False)   # exact: denom is (B,TQ,1)

    # TODO(synk): dropout is eval-mode identity here.
    dropped = attn_

    # output = attn_ @ v  -- probabilities cast to v's dtype for the MXU.
    output = jnp.einsum("bqk,bkd->bqd", dropped.astype(v.dtype), v,
                        preferred_element_type=jnp.float32)

    out_ref[...] = output.astype(out_ref.dtype)
    attn_ref[...] = attn_.astype(attn_ref.dtype)
    log_attn_ref[...] = log_attn.astype(log_attn_ref.dtype)


def _vmem_limit_bytes():
    """Generation-aware VMEM limit (v5e/v6e: 128 MiB, v7x: 64 MiB per TC)."""
    try:
        cap = int(pltpu.get_tpu_info().vmem_capacity_bytes)
    except Exception:
        cap = 64 * 1024 * 1024          # conservative fallback (v7x per-TC)
    return min(100 * 1024 * 1024, (cap * 3) // 4)


def scaled_dot_product_attention(q, k, v, temperature, negative_slope=0.2,
                                 block_q=512, attn_dtype=None,
                                 log_attn_dtype=None, out_dtype=None):
    B, Lq, D = q.shape
    Bk, Lk, Dk = k.shape
    Bv, Lkv, Dv = v.shape
    assert D == Dk and Bk == B and Bv == B and Lkv == Lk

    out_dtype = jnp.dtype(q.dtype if out_dtype is None else out_dtype)
    attn_dtype = jnp.dtype(q.dtype if attn_dtype is None else attn_dtype)
    log_attn_dtype = jnp.dtype(q.dtype if log_attn_dtype is None
                               else log_attn_dtype)

    in_item = jnp.dtype(q.dtype).itemsize
    out_item = out_dtype.itemsize
    attn_item = max(attn_dtype.itemsize, log_attn_dtype.itemsize)

    # One constant drives both the compiler VMEM limit and the block sizing.
    vmem_limit = _vmem_limit_bytes()
    budget = vmem_limit // 2

    def per_batch_bytes(tq):
        # Double-buffered pipeline I/O plus ~8 live f32 score-sized temporaries
        # (scores, shifted, exp, leaky, p, attn_, log_attn, casts).
        in_b = (tq * D + Lk * D + Lk * Dv) * in_item
        out_b = tq * Dv * out_item + 2 * tq * Lk * attn_item
        interm = 8 * tq * Lk * 4
        return 2 * (in_b + out_b) + interm

    # ---- Lq tile: full Lq when small enough, otherwise the largest
    # multiple-of-8 divisor of Lq <= block_q that fits the per-batch budget.
    bq = max(8, (int(block_q) // 8) * 8)
    cands = [Lq] if Lq <= bq else []
    start = min(bq, (Lq // 8) * 8)
    cands += [t for t in range(start, 7, -8) if t < Lq and Lq % t == 0]
    TQ = None
    for t in cands:
        if per_batch_bytes(t) <= budget:
            TQ = t
            break
    if TQ is None:
        # TODO(synk): no multiple-of-8 divisor of Lq fits the budget; take the
        # smallest candidate (or whole Lq) rather than padding, which would
        # reintroduce extra HBM passes over the attention matrices.
        TQ = cands[-1] if cands else Lq
    n_q_tiles = pl.cdiv(Lq, TQ)      # TQ divides Lq (or TQ == Lq)

    # ---- batch block: as many batches as fit the budget; no divisibility
    # requirement (cdiv grid, partial last block), and keep >= 2 grid steps so
    # v7x's 2 TensorCores can both be used via the "parallel" semantics.
    cap = max(1, budget // per_batch_bytes(TQ))
    if n_q_tiles == 1 and B >= 2:
        cap = min(cap, max(1, B // 2))
    B_BLK = int(min(B, cap))

    grid = (pl.cdiv(B, B_BLK), n_q_tiles)

    kernel = functools.partial(
        _sdpa_kernel,
        inv_temperature=1.0 / float(temperature),
        negative_slope=float(negative_slope),
    )

    grid_spec = pltpu.PrefetchScalarGridSpec(
        num_scalar_prefetch=0,
        grid=grid,
        in_specs=[
            pl.BlockSpec((B_BLK, TQ, D), lambda b, i: (b, i, 0)),
            pl.BlockSpec((B_BLK, Lk, D), lambda b, i: (b, 0, 0)),   # resident over i
            pl.BlockSpec((B_BLK, Lk, Dv), lambda b, i: (b, 0, 0)),  # resident over i
        ],
        out_specs=[
            pl.BlockSpec((B_BLK, TQ, Dv), lambda b, i: (b, i, 0)),
            pl.BlockSpec((B_BLK, TQ, Lk), lambda b, i: (b, i, 0)),
            pl.BlockSpec((B_BLK, TQ, Lk), lambda b, i: (b, i, 0)),
        ],
    )

    out_shapes = (
        jax.ShapeDtypeStruct((B, Lq, Dv), out_dtype),       # output
        jax.ShapeDtypeStruct((B, Lq, Lk), attn_dtype),      # attn_
        jax.ShapeDtypeStruct((B, Lq, Lk), log_attn_dtype),  # log_attn
    )

    output, attn_, log_attn = pl.pallas_call(
        kernel,
        out_shape=out_shapes,
        grid_spec=grid_spec,
        compiler_params=pltpu.CompilerParams(
            dimension_semantics=("parallel", "parallel"),
            vmem_limit_bytes=int(vmem_limit),
        ),
    )(q, k, v)
    return output, attn_, log_attn


def _reference(q, k, v, temperature, negative_slope=0.2):
    # bmm(q, k^T) / T expressed as (q * (1/T)) @ k^T -- mathematically
    # identical to the torch module; scaling q first (like the kernel does)
    # keeps the comparison independent of the backend's default matmul
    # precision (same MXU input rounding point on both sides).
    scores = jnp.einsum("bqd,bkd->bqk", q * (1.0 / float(temperature)), k)
    log_attn = jax.nn.log_softmax(scores, axis=-1)
    leaky = jnp.where(scores > 0, scores, negative_slope * scores)
    attn_ = jax.nn.softmax(leaky, axis=-1)
    output = jnp.einsum("bqk,bkd->bqd", attn_, v)
    return output, attn_, log_attn


if __name__ == "__main__":
    root_key = jax.random.PRNGKey(0)

    def _run_case(case_id, B, Lq, Lk, D, Dv):
        kq, kk, kv = jax.random.split(jax.random.fold_in(root_key, case_id), 3)
        temperature = float(D) ** 0.5
        q = jax.random.normal(kq, (B, Lq, D), dtype=jnp.float32)
        k = jax.random.normal(kk, (B, Lk, D), dtype=jnp.float32)
        v = jax.random.normal(kv, (B, Lk, Dv), dtype=jnp.float32)

        out, attn_, log_attn = scaled_dot_product_attention(q, k, v, temperature)
        jax.block_until_ready((out, attn_, log_attn))

        assert out.shape == (B, Lq, Dv)
        assert attn_.shape == (B, Lq, Lk)
        assert log_attn.shape == (B, Lq, Lk)

        ref_out, ref_attn, ref_log_attn = _reference(q, k, v, temperature)
        assert jnp.allclose(out, ref_out, atol=1e-3, rtol=1e-3)
        assert jnp.allclose(attn_, ref_attn, atol=1e-3, rtol=1e-3)
        assert jnp.allclose(log_attn, ref_log_attn, atol=2e-4, rtol=2e-4)

    # Primary small case (GAT-style head dims).
    _run_case(1, B=2, Lq=8, Lk=8, D=32, Dv=32)
    # Unaligned Lk / Dv and odd batch: exercises true-Lk (unpadded) outputs.
    _run_case(2, B=3, Lq=24, Lk=40, D=16, Dv=24)

    print("KERNEL_OK")
</pallas_src>

<mosaic_0001>
module attributes {stable_mosaic.version = 11 : i64} {
  func.func @_sdpa_kernel(%arg0: i32, %arg1: i32, %arg2: memref<1x8x32xf32, #tpu.memory_space<vmem>>, %arg3: memref<1x8x32xf32, #tpu.memory_space<vmem>>, %arg4: memref<1x8x32xf32, #tpu.memory_space<vmem>>, %arg5: memref<1x8x32xf32, #tpu.memory_space<vmem>>, %arg6: memref<1x8x8xf32, #tpu.memory_space<vmem>>, %arg7: memref<1x8x8xf32, #tpu.memory_space<vmem>>) attributes {dimension_semantics = [#tpu.dimension_semantics<parallel>, #tpu.dimension_semantics<parallel>], iteration_bounds = array<i64: 2, 1>, scalar_prefetch = 0 : i64, scratch_operands = 0 : i64, tpu.core_type = #tpu.core_type<tc>, window_params = [{transform_indices = @transform_0, window_bounds = array<i64: 1, 8, 32>}, {transform_indices = @transform_1, window_bounds = array<i64: 1, 8, 32>}, {transform_indices = @transform_2, window_bounds = array<i64: 1, 8, 32>}, {transform_indices = @transform_3, window_bounds = array<i64: 1, 8, 32>}, {transform_indices = @transform_4, window_bounds = array<i64: 1, 8, 8>}, {transform_indices = @transform_5, window_bounds = array<i64: 1, 8, 8>}]} {
    %c0 = arith.constant 0 : index
    %c0_0 = arith.constant 0 : index
    %c0_1 = arith.constant 0 : index
    %0 = vector.load %arg2[%c0, %c0_0, %c0_1] : memref<1x8x32xf32, #tpu.memory_space<vmem>>, vector<1x8x32xf32>
    %cst = arith.constant 0.176776692 : f32
    %1 = vector.broadcast %cst : f32 to vector<1x8x32xf32>
    %2 = arith.mulf %0, %1 : vector<1x8x32xf32>
    %c0_2 = arith.constant 0 : index
    %c0_3 = arith.constant 0 : index
    %c0_4 = arith.constant 0 : index
    %3 = vector.load %arg3[%c0_2, %c0_3, %c0_4] : memref<1x8x32xf32, #tpu.memory_space<vmem>>, vector<1x8x32xf32>
    %c0_5 = arith.constant 0 : index
    %c0_6 = arith.constant 0 : index
    %c0_7 = arith.constant 0 : index
    %4 = vector.load %arg4[%c0_5, %c0_6, %c0_7] : memref<1x8x32xf32, #tpu.memory_space<vmem>>, vector<1x8x32xf32>
    "tpu.trace_start"() <{level = 10 : i32, message = "bqd,bkd->bqk"}> : () -> ()
    %cst_8 = arith.constant dense<0.000000e+00> : vector<1x8x8xf32>
    %5 = tpu.matmul %2, %3, %cst_8 {dimension_numbers = #tpu.dot_dimension_numbers<[2], [2], [1], [1], [0, 0, 0, 1, 1, 1], [0], [0]>} : vector<1x8x32xf32>, vector<1x8x32xf32>, vector<1x8x8xf32> -> vector<1x8x8xf32>
    "tpu.trace_stop"() : () -> ()
    %cst_9 = arith.constant dense<0xFF800000> : vector<1x8xf32>
    %6 = vector.multi_reduction <maximumf>, %5, %cst_9 [2] : vector<1x8x8xf32> to vector<1x8xf32>
    %7 = vector.shape_cast %6 : vector<1x8xf32> to vector<1x8x1xf32>
    %8 = vector.broadcast %7 : vector<1x8x1xf32> to vector<1x8x8xf32>
    %9 = arith.subf %5, %8 : vector<1x8x8xf32>
    %10 = math.exp %9 : vector<1x8x8xf32>
    %cst_10 = arith.constant dense<0.000000e+00> : vector<1x8xf32>
    %11 = vector.multi_reduction <add>, %10, %cst_10 [2] : vector<1x8x8xf32> to vector<1x8xf32>
    %12 = vector.shape_cast %11 : vector<1x8xf32> to vector<1x8x1xf32>
    %13 = math.log %12 : vector<1x8x1xf32>
    %14 = vector.broadcast %13 : vector<1x8x1xf32> to vector<1x8x8xf32>
    %15 = arith.subf %9, %14 : vector<1x8x8xf32>
    %cst_11 = arith.constant 0.000000e+00 : f32
    %16 = vector.broadcast %cst_11 : f32 to vector<1x8x8xf32>
    %17 = arith.cmpf ogt, %5, %16 : vector<1x8x8xf32>
    %cst_12 = arith.constant 2.000000e-01 : f32
    %18 = vector.broadcast %cst_12 : f32 to vector<1x8x8xf32>
    %19 = arith.mulf %18, %5 : vector<1x8x8xf32>
    %20 = arith.select %17, %5, %19 : vector<1x8x8xi1>, vector<1x8x8xf32>
    %cst_13 = arith.constant 0.000000e+00 : f32
    %21 = vector.broadcast %cst_13 : f32 to vector<1x8x1xf32>
    %22 = arith.cmpf ogt, %7, %21 : vector<1x8x1xf32>
    %cst_14 = arith.constant 2.000000e-01 : f32
    %23 = vector.broadcast %cst_14 : f32 to vector<1x8x1xf32>
    %24 = arith.mulf %23, %7 : vector<1x8x1xf32>
    %25 = arith.select %22, %7, %24 : vector<1x8x1xi1>, vector<1x8x1xf32>
    %26 = vector.broadcast %25 : vector<1x8x1xf32> to vector<1x8x8xf32>
    %27 = arith.subf %20, %26 : vector<1x8x8xf32>
    %28 = math.exp %27 : vector<1x8x8xf32>
    %cst_15 = arith.constant dense<0.000000e+00> : vector<1x8xf32>
    %29 = vector.multi_reduction <add>, %28, %cst_15 [2] : vector<1x8x8xf32> to vector<1x8xf32>
    %30 = vector.shape_cast %29 : vector<1x8xf32> to vector<1x8x1xf32>
    %31 = tpu.reciprocal %30 : vector<1x8x1xf32> -> vector<1x8x1xf32>
    %32 = vector.broadcast %31 : vector<1x8x1xf32> to vector<1x8x8xf32>
    %33 = arith.mulf %28, %32 : vector<1x8x8xf32>
    "tpu.trace_start"() <{level = 10 : i32, message = "bqk,bkd->bqd"}> : () -> ()
    %cst_16 = arith.constant dense<0.000000e+00> : vector<1x8x32xf32>
    %34 = tpu.matmul %33, %4, %cst_16 {dimension_numbers = #tpu.dot_dimension_numbers<[2], [1], [1], [2], [0, 0, 0, 1, 1, 2], [0], [0]>} : vector<1x8x8xf32>, vector<1x8x32xf32>, vector<1x8x32xf32> -> vector<1x8x32xf32>
    "tpu.trace_stop"() : () -> ()
    %c0_17 = arith.constant 0 : index
    %c0_18 = arith.constant 0 : index
    %c0_19 = arith.constant 0 : index
    %35 = vector.load %arg5[%c0_17, %c0_18, %c0_19] : memref<1x8x32xf32, #tpu.memory_space<vmem>>, vector<1x8x32xf32>
    tpu.vector_store %arg5[%c0_17, %c0_18, %c0_19], %34 {strides = array<i32>} : memref<1x8x32xf32, #tpu.memory_space<vmem>>, vector<1x8x32xf32>,
    %c0_20 = arith.constant 0 : index
    %c0_21 = arith.constant 0 : index
    %c0_22 = arith.constant 0 : index
    %36 = vector.load %arg6[%c0_20, %c0_21, %c0_22] : memref<1x8x8xf32, #tpu.memory_space<vmem>>, vector<1x8x8xf32>
    tpu.vector_store %arg6[%c0_20, %c0_21, %c0_22], %33 {strides = array<i32>} : memref<1x8x8xf32, #tpu.memory_space<vmem>>, vector<1x8x8xf32>,
    %c0_23 = arith.constant 0 : index
    %c0_24 = arith.constant 0 : index
    %c0_25 = arith.constant 0 : index
    %37 = vector.load %arg7[%c0_23, %c0_24, %c0_25] : memref<1x8x8xf32, #tpu.memory_space<vmem>>, vector<1x8x8xf32>
    tpu.vector_store %arg7[%c0_23, %c0_24, %c0_25], %15 {strides = array<i32>} : memref<1x8x8xf32, #tpu.memory_space<vmem>>, vector<1x8x8xf32>,
    return
  }
  func.func @transform_0(%arg0: i32, %arg1: i32) -> (i32, i32, i32) {
    %c0_i32 = arith.constant 0 : i32
    %c0_i32_0 = arith.constant 0 : i32
    return %arg0, %arg1, %c0_i32 : i32, i32, i32
  }
  func.func @transform_1(%arg0: i32, %arg1: i32) -> (i32, i32, i32) {
    %c0_i32 = arith.constant 0 : i32
    %c0_i32_0 = arith.constant 0 : i32
    %c0_i32_1 = arith.constant 0 : i32
    return %arg0, %c0_i32, %c0_i32_0 : i32, i32, i32
  }
  func.func @transform_2(%arg0: i32, %arg1: i32) -> (i32, i32, i32) {
    %c0_i32 = arith.constant 0 : i32
    %c0_i32_0 = arith.constant 0 : i32
    %c0_i32_1 = arith.constant 0 : i32
    return %arg0, %c0_i32, %c0_i32_0 : i32, i32, i32
  }
  func.func @transform_3(%arg0: i32, %arg1: i32) -> (i32, i32, i32) {
    %c0_i32 = arith.constant 0 : i32
    %c0_i32_0 = arith.constant 0 : i32
    return %arg0, %arg1, %c0_i32 : i32, i32, i32
  }
  func.func @transform_4(%arg0: i32, %arg1: i32) -> (i32, i32, i32) {
    %c0_i32 = arith.constant 0 : i32
    %c0_i32_0 = arith.constant 0 : i32
    return %arg0, %arg1, %c0_i32 : i32, i32, i32
  }
  func.func @transform_5(%arg0: i32, %arg1: i32) -> (i32, i32, i32) {
    %c0_i32 = arith.constant 0 : i32
    %c0_i32_0 = arith.constant 0 : i32
    return %arg0, %arg1, %c0_i32 : i32, i32, i32
  }
}

</mosaic_0001>

<bundles_post_ra>
// kernel: tpu_custom_call.1
= control target key start
LH: loop header
LB: loop body
LE: loop exit
PB: predicated region body
PF: predicated region fallthrough
CT: control target
= control target key end

     0   :  { %s1523_s0 = inlined_call_operand.hbm [shape: f32[2,8,32], index: 0, kind: input, shape index: {}]   ;;  %s1524_s1 = inlined_call_operand.hbm [shape: f32[2,8,32], index: 1, kind: input, shape index: {}]   ;;  %s1525_s2 = inlined_call_operand.hbm [shape: f32[2,8,32], index: 2, kind: input, shape index: {}]   ;;  %s1526_s3 = inlined_call_operand.hbm [shape: f32[2,8,32], index: 3, kind: output, shape index: {0}]   ;;  %s1527_s4 = inlined_call_operand.hbm [shape: f32[2,8,8], index: 4, kind: output, shape index: {1}]   ;;  %s1528_s5 = inlined_call_operand.hbm [shape: f32[2,8,8], index: 5, kind: output, shape index: {2}]  }
   0x1   :  { %1539 = sst [smem:[#allocation21_spill]] %s1524_s1 }
   0x2   :  { %11 = vsyncpa [#allocation3], 0 }
   0x3   :  { %13 = vsyncpa [#allocation3 + $0x1], 0 }
   0x4   :  { %14 = vsyncpa [#allocation6], 0 }
   0x5   :  { %16 = vsyncpa [#allocation6 + $0x1], 0 }
   0x6   :  { %17 = vsyncpa [#allocation4], 0 }
   0x7   :  { %19 = vsyncpa [#allocation4 + $0x1], 0 }
   0x8   :  { %20 = vsyncpa [#allocation10], 0 }
   0x9   :  { %22 = vsyncpa [#allocation10 + $0x1], 0  ;;  %s1183_s18 = smov 0   ;;  %s1185_s19 = smov 0  }
   0xa   :  { %s1187_s20 = smov 0   ;;  %s1189_s21 = smov 0  }
   0xb   :  { %s1191_s22 = smov 0   ;;  %s1193_s23 = smov 0  }
   0xc LB: > { %1540 = sst [smem:[#allocation16_spill]] %s1139_s22  ;;  %s1214_s24 = sadd.s32 4294967295, %s1143_s23   ;;  %s1143_s23 = sphi %s1193_s23, %s28_s23   ;;  %s1139_s22 = sphi %s1191_s22, %s1567_s22   ;;  %s1135_s21 = sphi %s1189_s21, %s1566_s21   ;;  %s1131_s20 = sphi %s1187_s20, %s1570_s20   ;;  %s1127_s19 = sphi %s1185_s19, %s1569_s19   ;;  %s1123_s18 = sphi %s1183_s18, %s1568_s18  }
   0xd   : > { %1541 = sst [smem:[#allocation17_spill]] %s1143_s23  ;;  %s1529_s25 = sadd.s32 4294967294, %s1143_s23  }
   0xe   : > { %s40_s26 = sadd.s32 1, %s1139_s22  ;;  %s49_s27 = sadd.s32 1, %s1131_s20 }
   0xf   : > { %p42_p0 = scmp.ge.s32.totalorder %s40_s26, 2  ;;  %p56_p1 = scmp.ne.s32.totalorder %s1131_s20, %s1127_s19 }
  0x10   : > { %p57_p2 = scmp.eq.s32.totalorder %s1143_s23, 0  ;;  %p62_p3 = scmp.ne.s32.totalorder %s1127_s19, %s1123_s18 }
  0x11   : > { %s1572_s26 = smov (%p42_p0, %s40_s26), 0  ;;  %p63_p5 = scmp.eq.s32.totalorder %s1214_s24, 0 }
  0x12   : > { %1542 = sst [smem:[#allocation18_spill]] %s1572_s26  ;;  %p1226_p4 = por %p57_p2, %p56_p1 }
  0x13   : > { %s44_s29 = ssub.s32 %s1139_s22, %s1572_s26  ;;  %p140_p6 = scmp.eq.s32.totalorder %s1214_s24, 1 }
  0x14   : > { %p47_p7 = scmp.eq.s32.totalorder %s44_s29, 0  ;;  %p1234_p8 = por %p63_p5, %p62_p3 }
  0x15   : > { %p1238_p9 = por %p140_p6, %p56_p1  ;;  %p146_p10 = scmp.eq.s32.totalorder %s1529_s25, 1 }
  0x16   : > { %s1544_s30 = scalar_select %p1234_p8, 1, 0 }
  0x17   : > { %s1545_s6 = scalar_select %p1238_p9, 1, 0 }
  0x18   : > { %s1245_s7 = scalar_select %p47_p7, %s1131_s20, %s49_s27  }
  0x19   : > { %p1247_p11 = por %p146_p10, %p62_p3  ;;  %p847_p13 = scmp.lt.s32.totalorder %s1143_s23, 2 }
  0x1a   : > { %1546 = sst [smem:[#allocation19_spill]] %s1245_s7  ;;  %s1530_s9 = sand.u32 1, %s1131_s20  }
  0x1b   : > { %s1547_s8 = scalar_select %p1247_p11, 1, 0 }
  0x1c   : > { %s1256_s10 = sshll.u32 %s1530_s9, 3  ;;  %s1259_s11 = sshll.u32 %s1139_s22, 7 }
  0x1d   : > { %1548 = sst [smem:[#allocation20_spill]] %s1547_s8  ;;  %p1263_p0 = pnand %p847_p13, %p1226_p4 }
  0x1e   : > { %s241_s13 = sand.u32 1, %s1143_s23   ;;  %s1550_s1 = sld [smem:[#allocation21_spill]] }
  0x1f   : > { %s1549_s12 = scalar_select %p1263_p0, 1, 0 }
  0x20   : > { %s245_s17 = scalar_lea.vmem [#allocation5], %s1256_s10  ;;  %s1279_s28 = scalar_lea.sflag [#allocation6], %s241_s13 }
  0x21   : > { %s252_s27 = sshll.u32 %s245_s17, 4  ;;  %p1285_p4 = pneg %p1263_p0  ;;  %s1276_s27 = int_to_ptr.vmem [resolvable:$true] %s252_s27 }
  0x24   : > { %s1272_s16 = scalar_lea.hbm %s1550_s1, %s1259_s11  ;;  %s912_s17 = scalar_lea.hbm %s1550_s1, 256 }
  0x25   : > { %s907_s29 = scalar_lea.hbm %s1272_s16, 128  ;;  %p913_p7 = scmp.lt.u32.totalorder %s1272_s16, %s1550_s1 }
  0x26   : > { %p908_p3 = scmp.ne.s32.totalorder %s1272_s16, %s907_s29  ;;  %p914_p10 = scmp.lt.u32.totalorder %s912_s17, %s907_s29 }
  0x27   : > { %p916_p12 = scmp.lt.u32.totalorder %s907_s29, %s1272_s16 }
  0x28   : > { %p910_p5 = pnand %p1285_p4, %p908_p3  ;;  %p915_p13 = por %p914_p10, %p913_p7 }
  0x2a   : > { %p911_p6 = pneg %p910_p5  ;;  %p917_p1 = por %p916_p12, %p915_p13 }
  0x2c   : > { %p918_p2 = pnand %p917_p1, %p911_p6 }
  0x2e   : > { %921 = shalt.err (!%p918_p2)
}
  0x2f   : > { %s922_s13 = scalar_lea.vmem %s1276_s27, 128  ;;  %s1145_s14 = smov [#allocation5]  }
  0x30   : > { %p923_p3 = scmp.ne.s32.totalorder %s1276_s27, %s922_s13  ;;  %s927_s15 = sshll.u32 %s1145_s14, 4  ;;  %s928_s15 = int_to_ptr.vmem [resolvable:$false] %s927_s15 }
  0x31   : > { %s929_s26 = scalar_lea.vmem %s928_s15, 256  ;;  %p930_p9 = scmp.lt.s32.totalorder %s1276_s27, %s928_s15 }
  0x32   : > { %p925_p5 = pnand %p923_p3, %p1285_p4  ;;  %p931_p8 = scmp.lt.s32.totalorder %s929_s26, %s922_s13 }
  0x34   : > { %p926_p11 = pneg %p925_p5  ;;  %p932_p7 = por %p931_p8, %p930_p9 }
  0x36   : > { %p933_p10 = pnand %p932_p7, %p926_p11 }
  0x38   : > { %936 = shalt.err (!%p933_p10)
}
  0x39   : > { %833 = dma.hbm_to_vmem [thread:$0]  (!%p1263_p0), %s1272_s16, 128, %s1276_s27, %s1279_s28  }
  0x3a   : > { %p1552_p12 = scmp.lt.s32.totalorder %s1143_s23, 3  ;;  %p1553_p1 = scmp.ge.s32.totalorder %s1143_s23, 1 }
  0x3b   : > { %s1321_s13 = scalar_lea.hbm %s1523_s0, %s1259_s11  ;;  %s226_s14 = scalar_lea.vmem [#allocation2], %s1256_s10 }
  0x3c   : > { %p1313_p2 = pnand %p1553_p1, %p1552_p12  ;;  %s234_s15 = sshll.u32 %s226_s14, 4  ;;  %s1324_s15 = int_to_ptr.vmem [resolvable:$true] %s234_s15 }
  0x3d   : > { %s1330_s26 = scalar_lea.hbm %s1525_s2, %s1259_s11  ;;  %s1555_s1 = sand.u32 1, %s1131_s20  }
  0x3e   : > { %s1554_s9 = scalar_select %p1313_p2, 1, 0 }
  0x3f   : > { %s223_s22 = scalar_lea.sflag [#allocation3], %s1555_s1  ;;  %s937_s7 = scalar_lea.hbm %s1321_s13, 128 }
  0x40   : > { %p938_p8 = scmp.ne.s32.totalorder %s1321_s13, %s937_s7  ;;  %s942_s23 = scalar_lea.hbm %s1523_s0, 256 }
  0x41   : > { %p943_p6 = scmp.lt.u32.totalorder %s1321_s13, %s1523_s0  ;;  %p944_p13 = scmp.lt.u32.totalorder %s942_s23, %s937_s7 }
  0x42   : > { %p940_p9 = pnand %p938_p8, %p1285_p4  ;;  %p946_p5 = scmp.lt.u32.totalorder %s937_s7, %s1321_s13 }
  0x43   : > { %p945_p3 = por %p944_p13, %p943_p6 }
  0x44   : > { %p941_p11 = pneg %p940_p9 }
  0x45   : > { %p947_p7 = por %p946_p5, %p945_p3 }
  0x47   : > { %p948_p10 = pnand %p947_p7, %p941_p11 }
  0x49   : > { %951 = shalt.err (!%p948_p10)
}
  0x4a   : > { %s952_s1 = scalar_lea.vmem %s1324_s15, 128  ;;  %s1146_s11 = smov [#allocation2]  }
  0x4b   : > { %p953_p12 = scmp.ne.s32.totalorder %s1324_s15, %s952_s1  ;;  %s957_s16 = sshll.u32 %s1146_s11, 4  ;;  %s958_s16 = int_to_ptr.vmem [resolvable:$false] %s957_s16 }
  0x4c   : > { %s959_s8 = scalar_lea.vmem %s958_s16, 256  ;;  %p960_p9 = scmp.lt.s32.totalorder %s1324_s15, %s958_s16 }
  0x4d   : > { %p955_p1 = pnand %p953_p12, %p1285_p4  ;;  %p961_p2 = scmp.lt.s32.totalorder %s959_s8, %s952_s1 }
  0x4f   : > { %p956_p8 = pneg %p955_p1  ;;  %p962_p6 = por %p961_p2, %p960_p9 }
  0x51   : > { %p963_p13 = pnand %p962_p6, %p956_p8 }
  0x53   : > { %966 = shalt.err (!%p963_p13)
}
  0x54   : > { %830 = dma.hbm_to_vmem [thread:$0]  (!%p1263_p0), %s1321_s13, 128, %s1324_s15, %s223_s22  }
  0x55   : > { %s263_s23 = scalar_lea.vmem [#allocation7], %s1256_s10  ;;  %s967_s27 = scalar_lea.hbm %s1330_s26, 128 }
  0x56   : > { %s270_s7 = sshll.u32 %s263_s23, 4  ;;  %p968_p11 = scmp.ne.s32.totalorder %s1330_s26, %s967_s27  ;;  %s271_s7 = int_to_ptr.vmem [resolvable:$true] %s270_s7 }
  0x57   : > { %s972_s14 = scalar_lea.hbm %s1525_s2, 256  ;;  %p973_p5 = scmp.lt.u32.totalorder %s1330_s26, %s1525_s2 }
  0x58   : > { %p970_p2 = pnand %p968_p11, %p1285_p4  ;;  %p974_p7 = scmp.lt.u32.totalorder %s972_s14, %s967_s27 }
  0x59   : > { %p976_p12 = scmp.lt.u32.totalorder %s967_s27, %s1330_s26 }
  0x5a   : > { %p971_p3 = pneg %p970_p2  ;;  %p975_p10 = por %p974_p7, %p973_p5 }
  0x5c   : > { %p977_p1 = por %p976_p12, %p975_p10 }
  0x5e   : > { %p978_p8 = pnand %p977_p1, %p971_p3 }
  0x60   : > { %981 = shalt.err (!%p978_p8)
}
  0x61   : > { %s982_s22 = scalar_lea.vmem %s271_s7, 128  ;;  %s1147_s10 = smov [#allocation7]  }
  0x62   : > { %p983_p9 = scmp.ne.s32.totalorder %s271_s7, %s982_s22  ;;  %s987_s13 = sshll.u32 %s1147_s10, 4  ;;  %s988_s13 = int_to_ptr.vmem [resolvable:$false] %s987_s13 }
  0x63   : > { %s989_s15 = scalar_lea.vmem %s988_s13, 256  ;;  %p990_p11 = scmp.lt.s32.totalorder %s271_s7, %s988_s13 }
  0x64   : > { %p985_p6 = pnand %p983_p9, %p1285_p4  ;;  %p991_p2 = scmp.lt.s32.totalorder %s989_s15, %s982_s22 }
  0x66   : > { %p986_p13 = pneg %p985_p6  ;;  %p992_p0 = por %p991_p2, %p990_p11 }
  0x68   : > { %p993_p5 = pnand %p992_p0, %p986_p13 }
  0x6a   : > { %996 = shalt.err (!%p993_p5)
}
  0x6b   : > { %p1556_p7 = scmp.ne.s32.totalorder %s1549_s12, 0  ;;  %p1557_p3 = scmp.ne.s32.totalorder %s1554_s9, 0 }
  0x6c   : > { %s1377_s25 = sand.u32 (!%p1557_p3), 1, %s1127_s19   ;;  %p1558_p0 = scmp.ne.s32.totalorder (!%p1557_p3), %s1544_s30, 0 }
  0x6d   : > { %836 = dma.hbm_to_vmem [thread:$0]  (!%p1556_p7), %s1330_s26, 128, %s271_s7, %s1279_s28  }
  0x6e   : > { %279 = sbr.rel (%p1557_p3) target bundleno = 882 (0x372), region = 32  ;;  %s1380_s16 = sshll.u32 (!%p1557_p3), %s1377_s25, 3 }
  0x6f   : > { %s282_s8 = scalar_lea.sflag (!%p1557_p3), [#allocation3], %s1377_s25  ;;  %s285_s23 = scalar_lea.vmem (!%p1557_p3), [#allocation2], %s1380_s16 }
  0x75   : > { %1106 = dma.done.wait (%p1558_p0), %s282_s8, 128  }
  0x76   : > { %1108 = vsyncadd (%p1558_p0), %s282_s8, 4294967168  ;;  %s290_s12 = sand.u32 1, %s1214_s24   ;;  %s294_s9 = scalar_lea.vmem [#allocation5], %s1380_s16 }
  0x77   : > { %s291_s28 = scalar_lea.sflag [#allocation6], %s290_s12 }
  0x78   : > { %1110 = dma.done.wait (%p1558_p0), %s291_s28, 256  }
  0x79   : > { %1112 = vsyncadd (%p1558_p0), %s291_s28, 4294967040  ;;  %v1148_v0 = vmov 0.0   ;;  %vm1149_vm0 = vmmov 0   ;;  %vm354_vm1 = vcmask 261120   ;;  %v352_v1 = vld [vmem:[%s294_s9] sm:$0xff]  ;;  %v350_v2 = vld [vmem:[%s285_s23] sm:$0xff] }
  0x7a   : > { %805 = vmatprep.subr.mxu0 %v1148_v0  ;;  %807 = vmatprep.mubr.msk.f32.mxu0 %vm1149_vm0, %v1148_v0  ;;  %v351_v3 = vmul.f32 0.17677669, %v350_v2  ;;  %vm431_vm2 = vcmask 64512   ;;  %s303_s30 = scalar_lea.vmem [#allocation7], %s1380_s16  ;;  %s349_s26 = scalar_lea.vmem [#allocation11], %s1380_s16 }
  0x7b   : > { %810 = vmatprep.subr.mxu1 %v1148_v0  ;;  %812 = vmatprep.mubr.msk.f32.mxu1 %vm1149_vm0, %v1148_v0  ;;  %v353_v20 = vld [vmem:[%s303_s30] sm:$0xff]  ;;  %s342_s7 = scalar_lea.vmem [#allocation9], %s1380_s16  ;;  %s1410_s27 = sshll.u32 %s1135_s21, 7 }
  0x7c   : > { %806 = vmatpush3.xpose.msk.msra.mxu0 %vm354_vm1, %v352_v1  ;;  %811 = vmatpush3.msra.mxu1 %v353_v20  ;;  %s573_s29 = sshll.u32 %s342_s7, 4  ;;  %s1416_s1 = scalar_lea.hbm %s1527_s4, %s1410_s27  ;;  %s574_s29 = int_to_ptr.vmem [resolvable:$true] %s573_s29 }
  0x7d   : > { %s1420_s11 = scalar_lea.sflag [#allocation10], %s290_s12  ;;  %s997_s22 = scalar_lea.vmem %s574_s29, 128 }
  0x7e   : > { %p998_p4 = scmp.ne.s32.totalorder %s574_s29, %s997_s22  ;;  %p1559_p10 = scmp.ne.s32.totalorder %s1545_s6, 0 }
  0x7f   : > { %808 = vmatmul.mubr.msk.f32.vlgmr.msra.gmra.mrb[0].mxu0 %vm354_vm1, %v351_v3  ;;  %s1150_s10 = smov [#allocation9]  }
  0x80   : > { %p999_p12 = pnand %p998_p4, %p1559_p10  ;;  %s1001_s13 = sshll.u32 %s1150_s10, 4  ;;  %s1002_s13 = int_to_ptr.vmem [resolvable:$false] %s1001_s13 }
  0x81   : > { %s1003_s21 = scalar_lea.vmem %s1002_s13, 256  ;;  %p1004_p8 = scmp.lt.s32.totalorder %s574_s29, %s1002_s13 }
  0x82   : > { %p1000_p1 = pneg %p999_p12  ;;  %p1005_p9 = scmp.lt.s32.totalorder %s1003_s21, %s997_s22 }
  0x84   : > { %p1006_p6 = por %p1005_p9, %p1004_p8 }
  0x86   : > { %p1007_p13 = pnand %p1006_p6, %p1000_p1 }
 0x152   : > { %v427_v4 = vpop.f32.mrb[0].mxu0 }
 0x153   : > { %v809_v5 = vpop.f32.mrb[1].mxu0  ;;  %v432_v6 = vsel %vm431_vm2, %v427_v4, -inf  ;;  %v445_v7 = vmul.f32 0.2, %v427_v4  ;;  %vm444_vm3 = vcmp.gt.f32.partialorder %v427_v4, 0.0 }
 0x154   : > { %433 = vmax.xlane.f32.xlu0 %v432_v6 }
 0x155   : > { %v446_v11 = vsel %vm444_vm3, %v427_v4, %v445_v7 }
 0x1e1   : > { %v434_v8 = vpop.xlane.xlu0 %433 }
 0x1e2   : > { %v435_v9 = vsub.f32 %v427_v4, %v434_v8  ;;  %vm447_vm4 = vcmp.gt.f32.partialorder %v434_v8, 0.0  ;;  %v448_v10 = vmul.f32 0.2, %v434_v8 }
 0x1e4   : > { %v436_v12 = vmul.f32 1.442695, %v435_v9  ;;  %v449_v13 = vsel %vm447_vm4, %v434_v8, %v448_v10 }
 0x1e5   : > { %v450_v14 = vsub.f32 %v446_v11, %v449_v13 }
 0x1e6   : > { %899 = vpow2.f32 %v436_v12 }
 0x1e7   : > { %v451_v15 = vmul.f32 1.442695, %v450_v14 }
 0x1e9   : > { %901 = vpow2.f32 %v451_v15 }
 0x1f0   : > { %v900_v16 = vpop.eup %899 }
 0x1f1   : > { %v438_v17 = vsel %vm431_vm2, %v900_v16, 0.0 }
 0x1f2   : > { %439 = vadd.xlane.f32.xlu1 %v438_v17 }
 0x1f3   : > { %v902_v18 = vpop.eup %901 }
 0x1f4   : > { %v453_v19 = vsel %vm431_vm2, %v902_v18, 0.0 }
 0x1f5   : > { %454 = vadd.xlane.f32.xlu0 %v453_v19 }
 0x27f   : > { %v440_v21 = vpop.xlane.xlu1 %439 }
 0x280   : > { %903 = vlog2.f32 %v440_v21 }
 0x282   : > { %v455_v22 = vpop.xlane.xlu0 %454 }
 0x283   : > { %905 = vrcp.f32 %v455_v22 }
 0x28a   : > { %v904_v23 = vpop.eup %903 }
 0x28b   : > { %v442_v24 = vmul.f32 0.6931472, %v904_v23 }
 0x28d   : > { %v906_v25 = vpop.eup %905  ;;  %v443_v26 = vsub.f32 %v435_v9, %v442_v24 }
 0x28e   : > { %v457_v27 = vmul.f32 %v906_v25, %v902_v18 }
 0x28f   : > { %533 = vst.msk [vmem:[%s349_s26] sm:$0xff] %vm431_vm2, %v443_v26 }
 0x290   : > { %813 = vmatmul.mubr.msk.f32.vlgmr.msra.gmra.mrb[0].mxu1 %vm431_vm2, %v457_v27  ;;  %532 = vst.msk [vmem:[%s342_s7] sm:$0xff] %vm431_vm2, %v457_v27 }
 0x291   : > { %1010 = shalt.err (!%p1007_p13)
}
 0x292   : > { %s1011_s24 = scalar_lea.hbm %s1416_s1, 128  ;;  %s1015_s23 = scalar_lea.hbm %s1527_s4, 256 }
 0x293   : > { %p1012_p11 = scmp.ne.s32.totalorder %s1416_s1, %s1011_s24  ;;  %p1016_p7 = scmp.lt.u32.totalorder %s1416_s1, %s1527_s4 }
 0x294   : > { %p1017_p3 = scmp.lt.u32.totalorder %s1015_s23, %s1011_s24  ;;  %p1019_p4 = scmp.lt.u32.totalorder %s1011_s24, %s1416_s1 }
 0x295   : > { %p1013_p2 = pnand %p1012_p11, %p1559_p10 }
 0x296   : > { %p1018_p0 = por %p1017_p3, %p1016_p7 }
 0x297   : > { %p1014_p5 = pneg %p1013_p2 }
 0x298   : > { %p1020_p12 = por %p1019_p4, %p1018_p0 }
 0x29a   : > { %p1021_p1 = pnand %p1020_p12, %p1014_p5 }
 0x29c   : > { %1024 = shalt.err (!%p1021_p1)
}
 0x29d   : > { %822 = dma.vmem_to_hbm [thread:$0]  (%p1559_p10), %s574_s29, 128, %s1416_s1, %s1420_s11  }
 0x29e   : > { %s1444_s7 = scalar_lea.hbm %s1528_s5, %s1410_s27  ;;  %s587_s17 = sshll.u32 %s349_s26, 4  ;;  %s588_s17 = int_to_ptr.vmem [resolvable:$true] %s587_s17 }
 0x29f   : > { %s1025_s14 = scalar_lea.vmem %s588_s17, 128  ;;  %s1151_s22 = smov [#allocation11]  }
 0x2a0   : > { %p1026_p8 = scmp.ne.s32.totalorder %s588_s17, %s1025_s14  ;;  %s1029_s10 = sshll.u32 %s1151_s22, 4  ;;  %s1030_s10 = int_to_ptr.vmem [resolvable:$false] %s1029_s10 }
 0x2a1   : > { %s1031_s13 = scalar_lea.vmem %s1030_s10, 256  ;;  %p1032_p13 = scmp.lt.s32.totalorder %s588_s17, %s1030_s10 }
 0x2a2   : > { %p1027_p9 = pnand %p1026_p8, %p1559_p10  ;;  %p1033_p11 = scmp.lt.s32.totalorder %s1031_s13, %s1025_s14 }
 0x2a4   : > { %p1028_p6 = pneg %p1027_p9  ;;  %p1034_p2 = por %p1033_p11, %p1032_p13 }
 0x2a6   : > { %p1035_p5 = pnand %p1034_p2, %p1028_p6 }
 0x2a8   : > { %1038 = shalt.err (!%p1035_p5)
}
 0x2a9   : > { %s1039_s26 = scalar_lea.hbm %s1444_s7, 128  ;;  %s1043_s21 = scalar_lea.hbm %s1528_s5, 256 }
 0x2aa   : > { %p1040_p7 = scmp.ne.s32.totalorder %s1444_s7, %s1039_s26  ;;  %p1044_p4 = scmp.lt.u32.totalorder %s1444_s7, %s1528_s5 }
 0x2ab   : > { %p1045_p12 = scmp.lt.u32.totalorder %s1043_s21, %s1039_s26  ;;  %p1047_p8 = scmp.lt.u32.totalorder %s1039_s26, %s1444_s7 }
 0x2ac   : > { %p1041_p3 = pnand %p1040_p7, %p1559_p10 }
 0x2ad   : > { %p1046_p1 = por %p1045_p12, %p1044_p4 }
 0x2ae   : > { %p1042_p0 = pneg %p1041_p3 }
 0x2af   : > { %p1048_p9 = por %p1047_p8, %p1046_p1 }
 0x2b1   : > { %p1049_p6 = pnand %p1048_p9, %p1042_p0 }
 0x2b3   : > { %1052 = shalt.err (!%p1049_p6)
}
 0x2b4   : > { %823 = dma.vmem_to_hbm [thread:$0]  (%p1559_p10), %s588_s17, 128, %s1444_s7, %s1420_s11  }
 0x2b5   : > { %s335_s8 = scalar_lea.vmem [#allocation8], %s1380_s16  ;;  %s1471_s9 = scalar_lea.hbm %s1526_s3, %s1410_s27 }
 0x2b6   : > { %s559_s23 = sshll.u32 %s335_s8, 4  ;;  %s535_s30 = scalar_lea.sflag [#allocation4], %s1377_s25  ;;  %s1473_s23 = int_to_ptr.vmem [resolvable:$true] %s559_s23 }
 0x2b7   : > { %s1053_s14 = scalar_lea.vmem %s1473_s23, 128  ;;  %s1152_s16 = smov [#allocation8]  }
 0x2b8   : > { %p1054_p13 = scmp.ne.s32.totalorder %s1473_s23, %s1053_s14  ;;  %s1057_s11 = sshll.u32 %s1152_s16, 4  ;;  %s1058_s11 = int_to_ptr.vmem [resolvable:$false] %s1057_s11 }
 0x2b9   : > { %s1059_s27 = scalar_lea.vmem %s1058_s11, 256  ;;  %p1060_p5 = scmp.lt.s32.totalorder %s1473_s23, %s1058_s11 }
 0x2ba   : > { %p1055_p11 = pnand %p1054_p13, %p1559_p10  ;;  %p1061_p7 = scmp.lt.s32.totalorder %s1059_s27, %s1053_s14 }
 0x2bc   : > { %p1056_p2 = pneg %p1055_p11  ;;  %p1062_p3 = por %p1061_p7, %p1060_p5 }
 0x2be   : > { %p1063_p0 = pnand %p1062_p3, %p1056_p2 }
 0x363   : > { %v527_v28 = vpop.f32.mrb[0].mxu1 }
 0x364   : > { %531 = vst.msk [vmem:[%s335_s8] sm:$0xff] %vm354_vm1, %v527_v28  ;;  %v814_v29 = vpop.f32.mrb[1].mxu1 }
 0x365   : > { %1066 = shalt.err (!%p1063_p0)
}
 0x366   : > { %s1067_s25 = scalar_lea.hbm %s1471_s9, 128  ;;  %s1071_s22 = scalar_lea.hbm %s1526_s3, 256 }
 0x367   : > { %p1068_p4 = scmp.ne.s32.totalorder %s1471_s9, %s1067_s25  ;;  %p1072_p8 = scmp.lt.u32.totalorder %s1471_s9, %s1526_s3 }
 0x368   : > { %p1073_p9 = scmp.lt.u32.totalorder %s1071_s22, %s1067_s25  ;;  %p1075_p13 = scmp.lt.u32.totalorder %s1067_s25, %s1471_s9 }
 0x369   : > { %p1069_p12 = pnand %p1068_p4, %p1559_p10 }
 0x36a   : > { %p1074_p6 = por %p1073_p9, %p1072_p8 }
 0x36b   : > { %p1070_p1 = pneg %p1069_p12 }
 0x36c   : > { %p1076_p11 = por %p1075_p13, %p1074_p6 }
 0x36e   : > { %p1077_p2 = pnand %p1076_p11, %p1070_p1 }
 0x370   : > { %1080 = shalt.err (!%p1077_p2)
}
 0x371   : > { %821 = dma.vmem_to_hbm [thread:$0]  (%p1559_p10), %s1473_s23, 128, %s1471_s9, %s535_s30  }
 0x372 PF: > { %s1560_s26 = sld [smem:[#allocation20_spill]]  ;;  %s1561_s29 = sld [smem:[#allocation17_spill]] }
 0x373   : > { %s599_s1 = sand.u32 1, %s1123_s18  }
 0x374   : > { %s600_s21 = scalar_lea.sflag [#allocation4], %s599_s1 }
 0x378   : > { %p1562_p5 = scmp.ne.s32.totalorder %s1560_s26, 0  ;;  %p1563_p7 = scmp.ge.s32.totalorder %s1561_s29, 2 }
 0x37a   : > { %p838_p3 = pnand %p1563_p7, %p1562_p5 }
 0x37c   : > { %1114 = dma.done.wait (!%p838_p3), %s600_s21, 128  }
 0x37d   : > { %1116 = vsyncadd (!%p838_p3), %s600_s21, 4294967168  ;;  %s1564_s24 = sadd.s32 4294967294, %s1561_s29  }
 0x37e   : > { %s608_s15 = sand.u32 1, %s1564_s24  }
 0x37f   : > { %s609_s8 = scalar_lea.sflag [#allocation10], %s608_s15 }
 0x380   : > { %1118 = dma.done.wait (!%p838_p3), %s609_s8, 256  }
 0x381   : > { %1120 = vsyncadd (!%p838_p3), %s609_s8, 4294967040  ;;  %s28_s23 = sadd.s32 1, %s1561_s29   ;;  %s1565_s6 = sld [smem:[#allocation19_spill]] }
 0x382   : > { %p25_p10 = scmp.ge.s32.totalorder %s28_s23, 4   ;;  %s1566_s21 = sld [smem:[#allocation16_spill]] }
 0x383   : > { %s1567_s22 = sld [smem:[#allocation18_spill]]  ;;  %s1568_s18 = smov %s1127_s19 }
 0x384   : > { %s1569_s19 = smov %s1131_s20  ;;  %27 = sbr.rel (!%p25_p10) target bundleno = 12 (0xc), region = 133 }
 0x387   : > { %s1570_s20 = smov %s1565_s6 }
 0x38b   :  { %623 = vsyncpa [#allocation3], 1 }
 0x38c   :  { %625 = vsyncpa [#allocation3 + $0x1], 1 }
 0x38d   :  { %626 = vsyncpa [#allocation6], 1 }
 0x38e   :  { %628 = vsyncpa [#allocation6 + $0x1], 1 }
 0x38f   :  { %629 = vsyncpa [#allocation4], 1 }
 0x390   :  { %631 = vsyncpa [#allocation4 + $0x1], 1 }
 0x391   :  { %632 = vsyncpa [#allocation10], 1 }
 0x392   :  { %634 = vsyncpa [#allocation10 + $0x1], 1 }

</bundles_post_ra>
